<compile_context>
chip_gen: v7x
topology: tpu7x:2x2x1
jax: 0.10.0
libtpu: 0.0.40
codegen_flags: <defaults>
</compile_context>

<pallas_src>
import functools

import jax
import jax.numpy as jnp
from jax.experimental import pallas as pl
from jax.experimental.pallas import tpu as pltpu

_LANE = 128    # lane width (fast axis) of a vreg
_SUBLANE = 8   # sublane multiple for float32 (would be 16 for bf16)


def _round_up(x, m):
    return ((x + m - 1) // m) * m


def _normalize_kernel(x_ref, mean_ref, std_ref, o_ref, *,
                      reverse_log2, divide_by_sum, log2, factor):
    x = x_ref[...].astype(jnp.float32)

    if reverse_log2:
        x = jnp.exp2(x) - 1.0                               # EUP
    if divide_by_sum:
        # Logical block shape is (row_tile, p): the reduce is over exactly the
        # p real columns, so no lane mask is needed.  Edge-block garbage rows
        # (ragged n) only affect themselves and are never written back.
        row_sum = jnp.sum(x, axis=1, keepdims=True)         # (tm, 1) XLU reduce
        x = x * (factor / row_sum)                          # exact, (tm,1) divide
    if log2:
        x = jnp.log2(x + 1.0)                               # EUP

    # (1, p) exact reciprocal computed ONCE per tile, broadcast-multiplied:
    # avoids tm*p per-element f32 divides on the VALU and adds no EUP load.
    inv_std = pl.reciprocal(std_ref[...], approx=False)
    o_ref[...] = ((x - mean_ref[...]) * inv_std).astype(o_ref.dtype)


def _choose_row_tile(n, p):
    """Pick the row tile in bytes (target ~4 MiB blocks), then apply caps."""
    p_lanes = _round_up(p, _LANE)          # VMEM tiles are lane-padded
    bytes_per_row = 4 * p_lanes            # float32

    # Target block size: ~4 MiB (85%+ of HBM roofline measured on v6e).
    target_block_bytes = 4 * 1024 * 1024
    row_tile = max(_SUBLANE,
                   (target_block_bytes // bytes_per_row) // _SUBLANE * _SUBLANE)

    # Pipeline footprint cap: 2 in-blocks + 2 out-blocks <= 24 MiB so the
    # double-buffered pipeline fits comfortably inside v7x's 64 MiB VMEM
    # (and trivially inside v5e/v6e's 128 MiB).
    max_rows = (24 * 1024 * 1024) // (4 * bytes_per_row)
    row_tile = min(row_tile, max(_SUBLANE, (max_rows // _SUBLANE) * _SUBLANE))

    # Keep the grid >= 8 steps when there is enough work: >= 4 steps per
    # TensorCore on v7x restores per-core software pipelining and 2-core load
    # balance; neutral on single-TC v5e/v6e.
    if n > 8 * _SUBLANE:
        row_tile = min(row_tile, _round_up(pl.cdiv(n, 8), _SUBLANE))

    # Never exceed the (sublane-rounded) problem size.
    row_tile = max(_SUBLANE, min(row_tile, _round_up(n, _SUBLANE)))
    return row_tile


def normalize_pallas(x, mean, std, *, log2, reverse_log2, divide_by_sum,
                     factor, row_tile=None, vmem_limit_bytes=None):
    """x: (n, p) float32; mean, std: (1, p) float32. Returns (n, p) float32."""
    n, p = x.shape
    assert mean.shape == (1, p) and std.shape == (1, p)
    # Tiling assumptions (sublane multiple, block-byte math) are float32-only.
    assert x.dtype == jnp.float32 and mean.dtype == jnp.float32 \
        and std.dtype == jnp.float32, "normalize_pallas expects float32 inputs"

    if row_tile is None:
        row_tile = _choose_row_tile(n, p)

    if vmem_limit_bytes is None:
        p_lanes = _round_up(p, _LANE)
        block_bytes = 4 * row_tile * p_lanes * 4 + 4 * p_lanes * 4
        # <= 32 MiB: no more than half of v7x physical VMEM.
        vmem_limit_bytes = int(min(max(2 * block_bytes, 16 << 20), 32 << 20))

    kernel = functools.partial(
        _normalize_kernel,
        reverse_log2=reverse_log2,
        divide_by_sum=divide_by_sum,
        log2=log2,
        factor=float(factor),
    )

    # Ragged n handled by Pallas edge-block masking: the last block's OOB rows
    # read unspecified data and their writes are dropped (row-wise ops only).
    grid = (pl.cdiv(n, row_tile),)
    out = pl.pallas_call(
        kernel,
        out_shape=jax.ShapeDtypeStruct((n, p), x.dtype),
        grid_spec=pltpu.PrefetchScalarGridSpec(
            num_scalar_prefetch=0,
            grid=grid,
            in_specs=[
                # Last block dim == full p (allowed even when p % 128 != 0).
                pl.BlockSpec((row_tile, p), lambda i: (i, 0)),  # X tile
                pl.BlockSpec((1, p), lambda i: (0, 0)),         # mean
                pl.BlockSpec((1, p), lambda i: (0, 0)),         # std
            ],
            out_specs=pl.BlockSpec((row_tile, p), lambda i: (i, 0)),
        ),
        compiler_params=pltpu.CompilerParams(
            dimension_semantics=("parallel",),
            vmem_limit_bytes=vmem_limit_bytes),
    )(x, mean, std)

    return out


def normalize_ref(x, mean, std, *, log2, reverse_log2, divide_by_sum, factor):
    x = x.astype(jnp.float32)
    if reverse_log2:
        x = 2.0 ** x - 1.0
    if divide_by_sum:
        x = x / jnp.sum(x, axis=1, keepdims=True) * factor
    if log2:
        x = jnp.log2(x + 1.0)
    return (x - mean) / std


if __name__ == "__main__":
    key = jax.random.PRNGKey(0)
    k_x, k_m, k_s = jax.random.split(key, 3)

    # Small shapes that still exercise ragged n (not a multiple of the row
    # tile -> Pallas edge block) and non-lane-aligned p (full-dim block).
    n, p = 300, 100
    # Positive inputs so log2 / divide_by_sum are well defined.
    x = jax.random.uniform(k_x, (n, p), jnp.float32, minval=0.1, maxval=2.0)
    mean = jax.random.normal(k_m, (1, p), jnp.float32) * 0.1
    std = jax.random.uniform(k_s, (1, p), jnp.float32, minval=0.5, maxval=1.5)

    configs = [
        dict(log2=True, reverse_log2=True, divide_by_sum=True, factor=3.0),
        dict(log2=False, reverse_log2=False, divide_by_sum=True, factor=1.0),
        dict(log2=False, reverse_log2=False, divide_by_sum=False, factor=1.0),
    ]

    for cfg in configs:
        out = jax.block_until_ready(normalize_pallas(x, mean, std, **cfg))
        ref = normalize_ref(x, mean, std, **cfg)
        assert out.shape == (n, p) and out.dtype == jnp.float32
        assert jnp.allclose(out, ref, rtol=1e-3, atol=1e-3), f"mismatch: {cfg}"

    print("KERNEL_OK")
</pallas_src>

<mosaic_0001>
module attributes {stable_mosaic.version = 11 : i64} {
  func.func @_normalize_kernel(%arg0: i32, %arg1: memref<40x100xf32, #tpu.memory_space<vmem>>, %arg2: memref<1x100xf32, #tpu.memory_space<vmem>>, %arg3: memref<1x100xf32, #tpu.memory_space<vmem>>, %arg4: memref<40x100xf32, #tpu.memory_space<vmem>>) attributes {dimension_semantics = [#tpu.dimension_semantics<parallel>], iteration_bounds = array<i64: 8>, scalar_prefetch = 0 : i64, scratch_operands = 0 : i64, tpu.core_type = #tpu.core_type<tc>, window_params = [{transform_indices = @transform_0, window_bounds = array<i64: 40, 100>}, {pipeline_mode = #tpu.pipeline_mode<synchronous>, transform_indices = @transform_1, window_bounds = array<i64: 1, 100>}, {pipeline_mode = #tpu.pipeline_mode<synchronous>, transform_indices = @transform_2, window_bounds = array<i64: 1, 100>}, {transform_indices = @transform_3, window_bounds = array<i64: 40, 100>}]} {
    %c0 = arith.constant 0 : index
    %c0_0 = arith.constant 0 : index
    %0 = vector.load %arg1[%c0, %c0_0] : memref<40x100xf32, #tpu.memory_space<vmem>>, vector<40x100xf32>
    %1 = math.exp2 %0 : vector<40x100xf32>
    %cst = arith.constant 1.000000e+00 : f32
    %2 = vector.broadcast %cst : f32 to vector<40x100xf32>
    %3 = arith.subf %1, %2 : vector<40x100xf32>
    %cst_1 = arith.constant dense<0.000000e+00> : vector<40xf32>
    %4 = vector.multi_reduction <add>, %3, %cst_1 [1] : vector<40x100xf32> to vector<40xf32>
    %5 = vector.shape_cast %4 : vector<40xf32> to vector<40x1xf32>
    %cst_2 = arith.constant 3.000000e+00 : f32
    %6 = vector.broadcast %cst_2 : f32 to vector<40x1xf32>
    %7 = arith.divf %6, %5 : vector<40x1xf32>
    %8 = vector.broadcast %7 : vector<40x1xf32> to vector<40x100xf32>
    %9 = arith.mulf %3, %8 : vector<40x100xf32>
    %cst_3 = arith.constant 1.000000e+00 : f32
    %10 = vector.broadcast %cst_3 : f32 to vector<40x100xf32>
    %11 = arith.addf %9, %10 : vector<40x100xf32>
    %12 = math.log %11 : vector<40x100xf32>
    %cst_4 = arith.constant 2.000000e+00 : f32
    %13 = math.log %cst_4 : f32
    %14 = vector.broadcast %13 : f32 to vector<40x100xf32>
    %15 = arith.divf %12, %14 : vector<40x100xf32>
    %c0_5 = arith.constant 0 : index
    %c0_6 = arith.constant 0 : index
    %16 = vector.load %arg3[%c0_5, %c0_6] : memref<1x100xf32, #tpu.memory_space<vmem>>, vector<1x100xf32>
    %17 = tpu.reciprocal %16 : vector<1x100xf32> -> vector<1x100xf32>
    %c0_7 = arith.constant 0 : index
    %c0_8 = arith.constant 0 : index
    %18 = vector.load %arg2[%c0_7, %c0_8] : memref<1x100xf32, #tpu.memory_space<vmem>>, vector<1x100xf32>
    %19 = vector.broadcast %18 : vector<1x100xf32> to vector<40x100xf32>
    %20 = arith.subf %15, %19 : vector<40x100xf32>
    %21 = vector.broadcast %17 : vector<1x100xf32> to vector<40x100xf32>
    %22 = arith.mulf %20, %21 : vector<40x100xf32>
    %c0_9 = arith.constant 0 : index
    %c0_10 = arith.constant 0 : index
    %23 = vector.load %arg4[%c0_9, %c0_10] : memref<40x100xf32, #tpu.memory_space<vmem>>, vector<40x100xf32>
    tpu.vector_store %arg4[%c0_9, %c0_10], %22 {strides = array<i32>} : memref<40x100xf32, #tpu.memory_space<vmem>>, vector<40x100xf32>,
    return
  }
  func.func @transform_0(%arg0: i32) -> (i32, i32) {
    %c0_i32 = arith.constant 0 : i32
    %c0_i32_0 = arith.constant 0 : i32
    return %arg0, %c0_i32 : i32, i32
  }
  func.func @transform_1(%arg0: i32) -> (i32, i32) {
    %c0_i32 = arith.constant 0 : i32
    %c0_i32_0 = arith.constant 0 : i32
    %c0_i32_1 = arith.constant 0 : i32
    return %c0_i32, %c0_i32_0 : i32, i32
  }
  func.func @transform_2(%arg0: i32) -> (i32, i32) {
    %c0_i32 = arith.constant 0 : i32
    %c0_i32_0 = arith.constant 0 : i32
    %c0_i32_1 = arith.constant 0 : i32
    return %c0_i32, %c0_i32_0 : i32, i32
  }
  func.func @transform_3(%arg0: i32) -> (i32, i32) {
    %c0_i32 = arith.constant 0 : i32
    %c0_i32_0 = arith.constant 0 : i32
    return %arg0, %c0_i32 : i32, i32
  }
}

</mosaic_0001>

<bundles_post_ra>
// kernel: tpu_custom_call.1
= control target key start
LH: loop header
LB: loop body
LE: loop exit
PB: predicated region body
PF: predicated region fallthrough
CT: control target
= control target key end

     0   :  { %8 = vsyncpa [#allocation3], 0  ;;  %s805_s0 = inlined_call_operand.hbm [shape: f32[300,100], index: 0, kind: input, shape index: {}]   ;;  %s806_s1 = inlined_call_operand.vmem [shape: f32[1,100], index: 1, kind: input, shape index: {}]   ;;  %s807_s2 = inlined_call_operand.vmem [shape: f32[1,100], index: 2, kind: input, shape index: {}]   ;;  %s808_s3 = inlined_call_operand.hbm [shape: f32[300,100], index: 3, kind: output, shape index: {}]  }
   0x1   :  { %10 = vsyncpa [#allocation3 + $0x1], 0 }
   0x2   :  { %11 = vsyncpa [#allocation4], 0 }
   0x3   :  { %13 = vsyncpa [#allocation4 + $0x1], 0  ;;  %s618_s12 = smov 0   ;;  %s620_s13 = smov 0  }
   0x4   :  { %s622_s14 = smov 0   ;;  %s624_s15 = smov 0  }
   0x5 LB: > { %s639_s16 = sadd.s32 4294967295, %s590_s15   ;;  %s395_s17 = sadd.s32 4294967294, %s590_s15   ;;  %s590_s15 = sphi %s624_s15, %s816_s15   ;;  %s586_s14 = sphi %s622_s14, %s815_s14   ;;  %s582_s13 = sphi %s620_s13, %s814_s13   ;;  %s578_s12 = sphi %s618_s12, %s813_s12  }
   0x6   : > { %s643_s18 = sadd.s32 1, %s590_s15   ;;  %s26_s19 = sadd.s32 1, %s586_s14 }
   0x7   : > { %s23_s20 = ssub.s32 %s590_s15, %s643_s18  ;;  %p33_p0 = scmp.ne.s32.totalorder %s586_s14, %s582_s13 }
   0x8   : > { %p24_p1 = scmp.eq.s32.totalorder %s23_s20, 0  ;;  %p34_p2 = scmp.eq.s32.totalorder %s590_s15, 0 }
   0x9   : > { %p39_p3 = scmp.ne.s32.totalorder %s582_s13, %s578_s12  ;;  %p40_p4 = scmp.eq.s32.totalorder %s639_s16, 0 }
   0xa   : > { %s655_s21 = scalar_select %p24_p1, %s586_s14, %s26_s19  }
   0xb   : > { %p35_p5 = por %p34_p2, %p33_p0  ;;  %p657_p6 = por %p40_p4, %p39_p3 }
   0xc   : > { %p105_p7 = scmp.eq.s32.totalorder %s639_s16, 7  ;;  %p111_p8 = scmp.eq.s32.totalorder %s395_s17, 7 }
   0xd   : > { %p397_p11 = scmp.ge.s32.totalorder %s590_s15, 8 }
   0xe   : > { %p662_p9 = por %p105_p7, %p33_p0  ;;  %p666_p10 = por %p111_p8, %p39_p3 }
   0xf   : > { %133 = sbr.rel (%p397_p11) target bundleno = 57 (0x39), region = 24 }
  0x10   : > { %s811_s24 = scalar_select %p666_p10, 1, 0 }
  0x16   : > { %136 = sbr.rel (!%p35_p5) target bundleno = 57 (0x39), region = 28  ;;  %s137_s25 = sand.u32 (%p35_p5), 1, %s586_s14  }
  0x17   : > { %s142_s26 = smul.u32 (%p35_p5), 5, %s590_s15  ;;  %s676_s4 = scalar_lea.sflag (%p35_p5), [#allocation3], %s137_s25 }
  0x18   : > { %s419_s27 = smul.u32 (%p35_p5), 40, %s137_s25 }
  0x19   : > { %s143_s28 = ssub.s32 (%p35_p5), 38, %s142_s26 }
  0x1a   : > { %p144_p12 = scmp.lt.s32.totalorder (%p35_p5), %s143_s28, 5  ;;  %s141_s5 = scalar_lea.vmem (%p35_p5), [#allocation2], %s419_s27 }
  0x1d   : > { %s818_s28 = smov (!%p144_p12, %s143_s28), 5 }
  0x1e   : > { %s673_s29 = sshll.u32 %s818_s28, 7 }
  0x1f   : > { %s148_s30 = ssub.s32 640, %s673_s29 }
  0x20   : > { %149 = vsyncadd %s676_s4, %s148_s30  ;;  %p399_p13 = scmp.ne.s32.totalorder %s673_s29, 0  ;;  %s417_s6 = smul.u32 640, %s590_s15 }
  0x21   : > { %s154_s7 = sshll.u32 %s141_s5, 4  ;;  %s500_s20 = scalar_lea.hbm %s805_s0, 4864  ;;  %s686_s7 = int_to_ptr.vmem [resolvable:$true] %s154_s7 }
  0x22   : > { %s684_s10 = scalar_lea.hbm %s805_s0, %s417_s6 }
  0x23   : > { %s496_s11 = scalar_lea.hbm %s684_s10, %s673_s29  ;;  %p501_p3 = scmp.lt.u32.totalorder %s684_s10, %s805_s0 }
  0x24   : > { %p497_p0 = scmp.ne.s32.totalorder %s684_s10, %s496_s11  ;;  %p502_p4 = scmp.lt.u32.totalorder %s500_s20, %s496_s11 }
  0x25   : > { %p504_p7 = scmp.lt.u32.totalorder %s496_s11, %s684_s10 }
  0x26   : > { %p498_p1 = pnand %p497_p0, %p399_p13  ;;  %p503_p5 = por %p502_p4, %p501_p3 }
  0x28   : > { %p499_p2 = pneg %p498_p1  ;;  %p505_p8 = por %p504_p7, %p503_p5 }
  0x2a   : > { %p506_p11 = pnand %p505_p8, %p499_p2 }
  0x2c   : > { %509 = shalt.err (!%p506_p11)
}
  0x2d   : > { %s510_s27 = scalar_lea.vmem %s686_s7, %s673_s29  ;;  %s592_s28 = smov [#allocation2]  }
  0x2e   : > { %p511_p12 = scmp.ne.s32.totalorder %s686_s7, %s510_s27  ;;  %s514_s30 = sshll.u32 %s592_s28, 4  ;;  %s515_s30 = int_to_ptr.vmem [resolvable:$false] %s514_s30 }
  0x2f   : > { %s516_s5 = scalar_lea.vmem %s515_s30, 1280  ;;  %p517_p10 = scmp.lt.s32.totalorder %s686_s7, %s515_s30 }
  0x30   : > { %p512_p0 = pnand %p511_p12, %p399_p13  ;;  %p518_p3 = scmp.lt.s32.totalorder %s516_s5, %s510_s27 }
  0x32   : > { %p513_p1 = pneg %p512_p0  ;;  %p519_p4 = por %p518_p3, %p517_p10 }
  0x34   : > { %p520_p5 = pnand %p519_p4, %p513_p1 }
  0x36   : > { %523 = shalt.err (!%p520_p5)
}
  0x37   : > { %s593_s6 = smov 128   ;;  %s594_s8 = smov 8  }
  0x38   : > { %160 = dma.hbm_to_vmem [thread:$0]  (%p399_p13), %s684_s10, %s673_s29, %s686_s7, %s676_s4, %s593_s6, %s593_s6, %s594_s8  }
  0x39 PF: > { %p403_p2 = scmp.ge.s32.totalorder %s590_s15, 1  ;;  %p162_p7 = scmp.lt.s32.totalorder %s590_s15, 9 }
  0x3b   : > { %p163_p8 = pnand %p403_p2, %p162_p7 }
  0x3c   : > { %s716_s9 = sand.u32 (!%p163_p8), 1, %s582_s13  }
  0x3d   : > { %166 = sbr.rel (%p163_p8) target bundleno = 299 (0x12b), region = 32  ;;  %s169_s17 = scalar_lea.sflag (!%p163_p8), [#allocation3], %s716_s9 }
  0x3e   : > { %s420_s11 = smul.u32 (!%p163_p8), 40, %s716_s9 }
  0x40   : > { %s172_s19 = scalar_lea.vmem (!%p163_p8), [#allocation2], %s420_s11 }
  0x44   : > { %569 = dma.done.wait (%p657_p6), %s169_s17, 640  }
  0x45   : > { %571 = vsyncadd (%p657_p6), %s169_s17, 4294966656  ;;  %v205_v0 = vld [vmem:[%s172_s19] sm:$0xff]  ;;  %v207_v1 = vld [vmem:[%s172_s19 + $0x10] sm:$0xff]  ;;  %vm220_vm0 = vcmask 818176   ;;  %v287_v40 = vlaneseq  ;;  %s194_s10 = scalar_lea.vmem [#allocation5], %s420_s11  ;;  %s303_s20 = scalar_lea.sflag [#allocation4], %s716_s9 }
  0x46   : > { %v206_v2 = vld [vmem:[%s172_s19 + $0x8] sm:$0xff]  ;;  %464 = vpow2.f32 %v205_v0  ;;  %v208_v3 = vld [vmem:[%s172_s19 + $0x18] sm:$0xff]  ;;  %v209_v4 = vld [vmem:[%s172_s19 + $0x20] sm:$0xff]  ;;  %s310_s25 = smul.u32 (%p662_p9), 5, %s639_s16 }
  0x47   : > { %466 = vpow2.f32 %v207_v1  ;;  %v272_v29 = vld [vmem:[%s807_s2] sm:$0x1]  ;;  %v288_v46 = vshrl.u32 %v287_v40, 7 }
  0x48   : > { %468 = vpow2.f32 %v206_v2  ;;  %v409_v53 = vld [vmem:[%s806_s1] ss:$0 sm:$0xff]  ;;  %s311_s26 = ssub.s32 (%p662_p9), 38, %s310_s25 }
  0x49   : > { %470 = vpow2.f32 %v208_v3  ;;  %v289_v49 = vsub.s32 0, %v288_v46  ;;  %p312_p6 = scmp.lt.s32.totalorder (%p662_p9), %s311_s26, 5 }
  0x4a   : > { %472 = vpow2.f32 %v209_v4 }
  0x50   : > { %v465_v5 = vpop.eup %464 }
  0x51   : > { %v467_v6 = vpop.eup %466  ;;  %v404_v7 = vadd.f32 -1.0, %v465_v5 }
  0x52   : > { %v469_v8 = vpop.eup %468  ;;  %v406_v9 = vadd.f32 -1.0, %v467_v6 }
  0x53   : > { %v471_v10 = vpop.eup %470  ;;  %v221_v11 = vsel %vm220_vm0, %v404_v7, 0.0  ;;  %v405_v12 = vadd.f32 -1.0, %v469_v8 }
  0x54   : > { %v473_v13 = vpop.eup %472  ;;  %222 = vadd.xlane.f32.xlu0 %v221_v11  ;;  %v227_v14 = vsel %vm220_vm0, %v406_v9, 0.0  ;;  %v407_v15 = vadd.f32 -1.0, %v471_v10 }
  0x55   : > { %228 = vadd.xlane.f32.xlu1 %v227_v14  ;;  %v224_v16 = vsel %vm220_vm0, %v405_v12, 0.0  ;;  %v408_v17 = vadd.f32 -1.0, %v473_v13 }
  0x56   : > { %v230_v18 = vsel %vm220_vm0, %v407_v15, 0.0 }
  0x57   : > { %v233_v19 = vsel %vm220_vm0, %v408_v17, 0.0 }
  0x58   : > { %225 = vadd.xlane.f32.xlu0 %v224_v16 }
  0x59   : > { %231 = vadd.xlane.f32.xlu1 %v230_v18 }
  0x5c   : > { %234 = vadd.xlane.f32.xlu0 %v233_v19 }
  0xe1   : > { %v223_v20 = vpop.xlane.xlu0 %222 }
  0xe2   : > { %474 = vrcp.f32 %v223_v20  ;;  %v229_v21 = vpop.xlane.xlu1 %228 }
  0xe3   : > { %476 = vrcp.f32 %v229_v21 }
  0xe5   : > { %v226_v22 = vpop.xlane.xlu0 %225 }
  0xe6   : > { %478 = vrcp.f32 %v226_v22  ;;  %v232_v23 = vpop.xlane.xlu1 %231 }
  0xe7   : > { %480 = vrcp.f32 %v232_v23 }
  0xe9   : > { %v235_v24 = vpop.xlane.xlu0 %234 }
  0xea   : > { %482 = vrcp.f32 %v235_v24 }
  0xeb   : > { %484 = vrcp.f32 %v272_v29 }
  0xec   : > { %v475_v25 = vpop.eup %474 }
  0xed   : > { %v477_v26 = vpop.eup %476  ;;  %v237_v27 = vmul.f32 3.0, %v475_v25 }
  0xee   : > { %v241_v28 = vmul.f32 3.0, %v477_v26 }
  0xef   : > { %v246_v30 = vmul.f32 %v404_v7, %v237_v27 }
  0xf0   : > { %v479_v31 = vpop.eup %478  ;;  %v248_v32 = vmul.f32 %v406_v9, %v241_v28 }
  0xf1   : > { %v481_v33 = vpop.eup %480  ;;  %v251_v34 = vadd.f32 1.0, %v246_v30  ;;  %v239_v35 = vmul.f32 3.0, %v479_v31 }
  0xf2   : > { %v253_v36 = vadd.f32 1.0, %v248_v32  ;;  %v243_v37 = vmul.f32 3.0, %v481_v33 }
  0xf3   : > { %486 = vlog2.f32 %v251_v34  ;;  %v247_v38 = vmul.f32 %v405_v12, %v239_v35 }
  0xf4   : > { %v483_v39 = vpop.eup %482  ;;  %488 = vlog2.f32 %v253_v36  ;;  %v249_v41 = vmul.f32 %v407_v15, %v243_v37 }
  0xf5   : > { %v252_v42 = vadd.f32 1.0, %v247_v38  ;;  %v245_v43 = vmul.f32 3.0, %v483_v39  ;;  %v485_v48 = vpop.eup %484 }
  0xf6   : > { %v254_v44 = vadd.f32 1.0, %v249_v41  ;;  %v290_v55 = vrot.slane %v485_v48, %v289_v49 }
  0xf7   : > { %490 = vlog2.f32 %v252_v42  ;;  %v250_v45 = vmul.f32 %v408_v17, %v245_v43 }
  0xf8   : > { %492 = vlog2.f32 %v254_v44 }
  0xf9   : > { %v255_v47 = vadd.f32 1.0, %v250_v45 }
  0xfb   : > { %494 = vlog2.f32 %v255_v47 }
  0xfd   : > { %v487_v50 = vpop.eup %486 }
  0xfe   : > { %v489_v51 = vpop.eup %488  ;;  %v257_v52 = vmul.f32 0.6931472, %v487_v50 }
  0xff   : > { %v261_v54 = vmul.f32 0.6931472, %v489_v51 }
 0x100   : > { %v267_v56 = vmul.f32 1.442695, %v257_v52 }
 0x101   : > { %v491_v57 = vpop.eup %490  ;;  %v269_v58 = vmul.f32 1.442695, %v261_v54 }
 0x102   : > { %v493_v59 = vpop.eup %492  ;;  %v281_v60 = vsub.f32 %v267_v56, %v409_v53  ;;  %v259_v61 = vmul.f32 0.6931472, %v491_v57 }
 0x103   : > { %v283_v62 = vsub.f32 %v269_v58, %v409_v53  ;;  %v263_v63 = vmul.f32 0.6931472, %v493_v59 }
 0x104   : > { %v292_v0 = vmul.f32 %v290_v55, %v281_v60  ;;  %v268_v1 = vmul.f32 1.442695, %v259_v61 }
 0x105   : > { %v495_v2 = vpop.eup %494  ;;  %v294_v3 = vmul.f32 %v290_v55, %v283_v62  ;;  %v270_v4 = vmul.f32 1.442695, %v263_v63 }
 0x106   : > { %297 = vst.msk [vmem:[%s194_s10] sm:$0xff] %vm220_vm0, %v292_v0  ;;  %v282_v5 = vsub.f32 %v268_v1, %v409_v53  ;;  %v265_v6 = vmul.f32 0.6931472, %v495_v2 }
 0x107   : > { %299 = vst.msk [vmem:[%s194_s10 + $0x10] sm:$0xff] %vm220_vm0, %v294_v3  ;;  %v284_v7 = vsub.f32 %v270_v4, %v409_v53 }
 0x108   : > { %v293_v8 = vmul.f32 %v290_v55, %v282_v5  ;;  %v271_v9 = vmul.f32 1.442695, %v265_v6  ;;  %309 = sbr.rel (!%p662_p9) target bundleno = 299 (0x12b), region = 40 }
 0x109   : > { %v295_v10 = vmul.f32 %v290_v55, %v284_v7 }
 0x10a   : > { %298 = vst.msk [vmem:[%s194_s10 + $0x8] sm:$0xff] %vm220_vm0, %v293_v8  ;;  %v285_v11 = vsub.f32 %v271_v9, %v409_v53 }
 0x10b   : > { %300 = vst.msk [vmem:[%s194_s10 + $0x18] sm:$0xff] %vm220_vm0, %v295_v10 }
 0x10c   : > { %v296_v12 = vmul.f32 %v290_v55, %v285_v11 }
 0x10e   : > { %301 = vst.msk [vmem:[%s194_s10 + $0x20] sm:$0xff] %vm220_vm0, %v296_v12 }
 0x10f   : > { %s820_s26 = smov (!%p312_p6, %s311_s26), 5 }
 0x110   : > { %s748_s27 = sshll.u32 %s820_s26, 7 }
 0x111   : > { %s316_s28 = ssub.s32 640, %s748_s27 }
 0x112   : > { %317 = vsyncadd %s303_s20, %s316_s28  ;;  %p411_p10 = scmp.ne.s32.totalorder %s748_s27, 0  ;;  %s418_s30 = smul.u32 640, %s639_s16 }
 0x113   : > { %s322_s23 = sshll.u32 %s194_s10, 4  ;;  %s595_s17 = smov [#allocation5]   ;;  %s760_s23 = int_to_ptr.vmem [resolvable:$true] %s322_s23 }
 0x114   : > { %s758_s8 = scalar_lea.hbm %s808_s3, %s418_s30  ;;  %s524_s11 = scalar_lea.vmem %s760_s23, %s748_s27 }
 0x115   : > { %p525_p9 = scmp.ne.s32.totalorder %s760_s23, %s524_s11  ;;  %s528_s19 = sshll.u32 %s595_s17, 4  ;;  %s529_s19 = int_to_ptr.vmem [resolvable:$false] %s528_s19 }
 0x116   : > { %s530_s16 = scalar_lea.vmem %s529_s19, 1280  ;;  %p531_p12 = scmp.lt.s32.totalorder %s760_s23, %s529_s19 }
 0x117   : > { %p526_p13 = pnand %p525_p9, %p411_p10  ;;  %p532_p0 = scmp.lt.s32.totalorder %s530_s16, %s524_s11 }
 0x119   : > { %p527_p11 = pneg %p526_p13  ;;  %p533_p1 = por %p532_p0, %p531_p12 }
 0x11b   : > { %p534_p3 = pnand %p533_p1, %p527_p11 }
 0x11d   : > { %537 = shalt.err (!%p534_p3)
}
 0x11e   : > { %s538_s22 = scalar_lea.hbm %s758_s8, %s748_s27  ;;  %s542_s7 = scalar_lea.hbm %s808_s3, 4864 }
 0x11f   : > { %p539_p4 = scmp.ne.s32.totalorder %s758_s8, %s538_s22  ;;  %p543_p7 = scmp.lt.u32.totalorder %s758_s8, %s808_s3 }
 0x120   : > { %p544_p8 = scmp.lt.u32.totalorder %s542_s7, %s538_s22  ;;  %p546_p9 = scmp.lt.u32.totalorder %s538_s22, %s758_s8 }
 0x121   : > { %p540_p5 = pnand %p539_p4, %p411_p10 }
 0x122   : > { %p545_p6 = por %p544_p8, %p543_p7 }
 0x123   : > { %p541_p2 = pneg %p540_p5 }
 0x124   : > { %p547_p13 = por %p546_p9, %p545_p6 }
 0x126   : > { %p548_p11 = pnand %p547_p13, %p541_p2 }
 0x128   : > { %551 = shalt.err (!%p548_p11)
}
 0x129   : > { %s596_s26 = smov 128   ;;  %s597_s28 = smov 8  }
 0x12a   : > { %328 = dma.vmem_to_hbm [thread:$0]  (%p411_p10), %s760_s23, %s748_s27, %s758_s8, %s303_s20, %s596_s26, %s596_s26, %s597_s28  }
 0x12b PF: > { %p427_p12 = scmp.ge.s32.totalorder %s590_s15, 2  ;;  %s337_s30 = sand.u32 1, %s578_s12  }
 0x12c   : > { %p812_p0 = scmp.ne.s32.totalorder %s811_s24, 0  ;;  %s338_s5 = scalar_lea.sflag [#allocation4], %s337_s30 }
 0x12e   : > { %p424_p1 = pnand %p427_p12, %p812_p0 }
 0x130   : > { %573 = dma.done.wait (!%p424_p1), %s338_s5, 640  }
 0x131   : > { %575 = vsyncadd (!%p424_p1), %s338_s5, 4294966656  ;;  %p16_p3 = scmp.ge.s32.totalorder %s643_s18, 10   ;;  %s813_s12 = smov %s582_s13 }
 0x132   : > { %s814_s13 = smov %s586_s14  ;;  %s815_s14 = smov %s655_s21 }
 0x133   : > { %s816_s15 = smov %s643_s18  ;;  %18 = sbr.rel (!%p16_p3) target bundleno = 5 (0x5), region = 77 }
 0x13a   :  { %343 = vsyncpa [#allocation3], 1 }
 0x13b   :  { %345 = vsyncpa [#allocation3 + $0x1], 1 }
 0x13c   :  { %346 = vsyncpa [#allocation4], 1 }
 0x13d   :  { %348 = vsyncpa [#allocation4 + $0x1], 1 }

</bundles_post_ra>
